<compile_context>
chip_gen: v7x
topology: tpu7x:2x2x1
jax: 0.10.0
libtpu: 0.0.40
codegen_flags: <defaults>
</compile_context>

<pallas_src>
import functools

import jax
import jax.numpy as jnp
from jax.experimental import pallas as pl
from jax.experimental.pallas import tpu as pltpu

LANE = 128     # TPU lane width (last dim)
SUBLANE = 8    # f32 sublane count (second-to-last dim)


def _round_up(n, m):
    return ((n + m - 1) // m) * m


def _cdiv(a, b):
    return (a + b - 1) // b


# ---------------------------------------------------------------------------
# Fused kernel: whole MLP in one body.
# ---------------------------------------------------------------------------
def _fused_mlp_kernel(*refs, num_layers: int):
    """refs = (x_ref, w0, b0, w1, b1, ..., w_{L-1}, b_{L-1}, o_ref).

    Hidden feature dims are zero-padded to 128 lanes; the first-layer in-dim and
    last-layer out-dim stay at their natural sizes. Intermediates never touch HBM.
    """
    x_ref = refs[0]
    o_ref = refs[-1]
    x = x_ref[...].astype(jnp.float32)
    for i in range(num_layers):
        w = refs[1 + 2 * i][...]
        b = refs[2 + 2 * i][...].astype(jnp.float32)   # (1, Dout_i), stays f32
        # Matmul operands in the stored weight dtype (f32 or bf16); MXU
        # accumulates in f32 either way.
        y = jnp.dot(x.astype(w.dtype), w, preferred_element_type=jnp.float32) + b
        if i != num_layers - 1:            # hidden layers get ReLU, last does not
            y = jnp.maximum(y, 0.0)
        x = y
    o_ref[...] = x.astype(o_ref.dtype)


def _fused_call(x, flat_params, out_dtype, num_layers, batch_block):
    B, din = x.shape
    dout = flat_params[-2].shape[1]        # last layer's natural out-dim
    kernel = functools.partial(_fused_mlp_kernel, num_layers=num_layers)
    out_shape = jax.ShapeDtypeStruct((B, dout), out_dtype)

    if B <= 256:
        # Gridless: whole (tiny) arrays in VMEM, no pipeline setup/epilogue.
        return pl.pallas_call(kernel, out_shape=out_shape)(x, *flat_params)

    # Adaptive tile: <= batch_block, but small enough that the grid has >= 2
    # (usually >= 4) steps so both v7x TensorCores get batch tiles.
    bb = max(256, min(batch_block, _round_up(_cdiv(B, 4), 256)))
    grid = (_cdiv(B, bb),)                 # ragged trailing block is masked by Pallas

    in_specs = [pl.BlockSpec((bb, din), lambda i: (i, 0))]
    for p in flat_params:
        # Full-array block + constant index_map -> fetched once, VMEM-resident
        # across all grid steps (block index never changes).
        in_specs.append(pl.BlockSpec(p.shape, lambda i: (0, 0)))

    return pl.pallas_call(
        kernel,
        out_shape=out_shape,
        grid=grid,
        in_specs=in_specs,
        out_specs=pl.BlockSpec((bb, dout), lambda i: (i, 0)),
        compiler_params=pltpu.CompilerParams(
            dimension_semantics=("parallel",)),   # v7x: shard batch tiles over 2 TCs
    )(x, *flat_params)


# ---------------------------------------------------------------------------
# Parameters
# ---------------------------------------------------------------------------
def init_qnetwork_params(key, state_size, action_size, num_units):
    """PyTorch nn.Linear-style init: U[-1/sqrt(fan_in), +1/sqrt(fan_in)].

    Returns logical (unpadded) params: list of (W:(in,out), b:(out,)).
    """
    dims = [state_size] + list(num_units) + [action_size]
    params = []
    for i in range(len(dims) - 1):
        fan_in, fan_out = dims[i], dims[i + 1]
        key, kw, kb = jax.random.split(key, 3)
        bound = 1.0 / jnp.sqrt(jnp.float32(fan_in))
        w = jax.random.uniform(kw, (fan_in, fan_out), jnp.float32, -bound, bound)
        b = jax.random.uniform(kb, (fan_out,), jnp.float32, -bound, bound)
        params.append((w, b))
    return params


def prepare_params(params, dtype=jnp.float32):
    """One-time layout prep (hoisted out of forward).

    Layer i weight (in, out) -> stored (in_i, out_i) with hidden dims zero-padded
    to 128 lanes; first layer keeps its natural in-dim (so the activation input
    needs no lane padding) and the last layer keeps its natural out-dim (so the
    output needs no lane padding / post-slice).  Biases -> (1, out_i) in f32.
    `dtype=jnp.bfloat16` stores weights in bf16 for the MXU (f32 accumulation).
    """
    n = len(params)
    flat = []
    for i, (w, b) in enumerate(params):
        din, dout = w.shape
        din_p = din if i == 0 else _round_up(din, LANE)
        dout_p = dout if i == n - 1 else _round_up(dout, LANE)
        w_p = jnp.zeros((din_p, dout_p), dtype).at[:din, :dout].set(w.astype(dtype))
        b_p = jnp.zeros((1, dout_p), jnp.float32).at[0, :dout].set(b)
        flat.extend([w_p, b_p])
    return tuple(flat)


# ---------------------------------------------------------------------------
# Forward
# ---------------------------------------------------------------------------
@functools.partial(jax.jit, static_argnames=("batch_block",))
def qnetwork_forward(state, padded_params, *, batch_block=1024):
    """Forward pass of QNetwork: [Linear -> ReLU]*H then final Linear."""
    num_layers = len(padded_params) // 2
    return _fused_call(state, padded_params, state.dtype, num_layers, batch_block)


def qnetwork_reference(params, state):
    """Pure-JAX reference (unpadded params) for correctness checking."""
    x = state
    n = len(params)
    for idx, (w, b) in enumerate(params):
        x = x @ w + b
        if idx != n - 1:
            x = jnp.maximum(x, 0.0)
    return x


# ---------------------------------------------------------------------------
if __name__ == "__main__":
    batch = 2
    state_size = 8
    action_size = 4
    num_units = [32, 32]   # two hidden FC layers

    key = jax.random.PRNGKey(0)
    key, kx = jax.random.split(key)
    state = jax.random.normal(kx, (batch, state_size), jnp.float32)

    params = init_qnetwork_params(key, state_size, action_size, num_units)
    padded_f32 = prepare_params(params)                       # exact f32 path
    padded_bf16 = prepare_params(params, dtype=jnp.bfloat16)  # bf16 MXU path

    # Small batch: gridless fused path, exact f32.
    out = jax.block_until_ready(qnetwork_forward(state, padded_f32))
    ref = qnetwork_reference(params, state)
    assert out.shape == (batch, action_size)
    assert jnp.allclose(out, ref, atol=1e-5, rtol=1e-5), "mismatch vs reference (small batch)"

    # Larger batch: batch-tiled grid with a ragged trailing block, exact f32.
    key, kb = jax.random.split(key)
    big_state = jax.random.normal(kb, (1000, state_size), jnp.float32)
    big_out = jax.block_until_ready(qnetwork_forward(big_state, padded_f32))
    big_ref = qnetwork_reference(params, big_state)
    assert big_out.shape == (1000, action_size)
    assert jnp.allclose(big_out, big_ref, atol=1e-5, rtol=1e-5), "mismatch vs reference (big batch)"

    # bf16-weight path (f32 accumulation): compare against a bf16-quantized f32 reference.
    bf16_params = [(w.astype(jnp.bfloat16).astype(jnp.float32), b) for w, b in params]
    bf16_out = jax.block_until_ready(qnetwork_forward(big_state, padded_bf16))
    bf16_ref = qnetwork_reference(bf16_params, big_state)
    assert bf16_out.shape == (1000, action_size)
    assert jnp.allclose(bf16_out, bf16_ref, atol=5e-2, rtol=5e-2), "mismatch vs reference (bf16)"

    print("KERNEL_OK")
</pallas_src>

<mosaic_0001>
module attributes {stable_mosaic.version = 11 : i64} {
  func.func @_fused_mlp_kernel(%arg0: memref<2x8xf32, #tpu.memory_space<vmem>>, %arg1: memref<8x128xf32, #tpu.memory_space<vmem>>, %arg2: memref<1x128xf32, #tpu.memory_space<vmem>>, %arg3: memref<128x128xf32, #tpu.memory_space<vmem>>, %arg4: memref<1x128xf32, #tpu.memory_space<vmem>>, %arg5: memref<128x4xf32, #tpu.memory_space<vmem>>, %arg6: memref<1x4xf32, #tpu.memory_space<vmem>>, %arg7: memref<2x4xf32, #tpu.memory_space<vmem>>) attributes {dimension_semantics = [], scalar_prefetch = 0 : i64, scratch_operands = 0 : i64, tpu.core_type = #tpu.core_type<tc>} {
    %c0 = arith.constant 0 : index
    %c0_0 = arith.constant 0 : index
    %0 = vector.load %arg0[%c0, %c0_0] : memref<2x8xf32, #tpu.memory_space<vmem>>, vector<2x8xf32>
    %c0_1 = arith.constant 0 : index
    %c0_2 = arith.constant 0 : index
    %1 = vector.load %arg1[%c0_1, %c0_2] : memref<8x128xf32, #tpu.memory_space<vmem>>, vector<8x128xf32>
    %c0_3 = arith.constant 0 : index
    %c0_4 = arith.constant 0 : index
    %2 = vector.load %arg2[%c0_3, %c0_4] : memref<1x128xf32, #tpu.memory_space<vmem>>, vector<1x128xf32>
    %cst = arith.constant dense<0.000000e+00> : vector<2x128xf32>
    %3 = tpu.matmul %0, %1, %cst {dimension_numbers = #tpu.dot_dimension_numbers<[1], [0], [0], [1], [0, 0, 1, 1], [], []>} : vector<2x8xf32>, vector<8x128xf32>, vector<2x128xf32> -> vector<2x128xf32>
    %4 = vector.broadcast %2 : vector<1x128xf32> to vector<2x128xf32>
    %5 = arith.addf %3, %4 : vector<2x128xf32>
    %cst_5 = arith.constant 0.000000e+00 : f32
    %6 = vector.broadcast %cst_5 : f32 to vector<2x128xf32>
    %7 = arith.maximumf %5, %6 : vector<2x128xf32>
    %c0_6 = arith.constant 0 : index
    %c0_7 = arith.constant 0 : index
    %8 = vector.load %arg3[%c0_6, %c0_7] : memref<128x128xf32, #tpu.memory_space<vmem>>, vector<128x128xf32>
    %c0_8 = arith.constant 0 : index
    %c0_9 = arith.constant 0 : index
    %9 = vector.load %arg4[%c0_8, %c0_9] : memref<1x128xf32, #tpu.memory_space<vmem>>, vector<1x128xf32>
    %cst_10 = arith.constant dense<0.000000e+00> : vector<2x128xf32>
    %10 = tpu.matmul %7, %8, %cst_10 {dimension_numbers = #tpu.dot_dimension_numbers<[1], [0], [0], [1], [0, 0, 1, 1], [], []>} : vector<2x128xf32>, vector<128x128xf32>, vector<2x128xf32> -> vector<2x128xf32>
    %11 = vector.broadcast %9 : vector<1x128xf32> to vector<2x128xf32>
    %12 = arith.addf %10, %11 : vector<2x128xf32>
    %cst_11 = arith.constant 0.000000e+00 : f32
    %13 = vector.broadcast %cst_11 : f32 to vector<2x128xf32>
    %14 = arith.maximumf %12, %13 : vector<2x128xf32>
    %c0_12 = arith.constant 0 : index
    %c0_13 = arith.constant 0 : index
    %15 = vector.load %arg5[%c0_12, %c0_13] : memref<128x4xf32, #tpu.memory_space<vmem>>, vector<128x4xf32>
    %c0_14 = arith.constant 0 : index
    %c0_15 = arith.constant 0 : index
    %16 = vector.load %arg6[%c0_14, %c0_15] : memref<1x4xf32, #tpu.memory_space<vmem>>, vector<1x4xf32>
    %cst_16 = arith.constant dense<0.000000e+00> : vector<2x4xf32>
    %17 = tpu.matmul %14, %15, %cst_16 {dimension_numbers = #tpu.dot_dimension_numbers<[1], [0], [0], [1], [0, 0, 1, 1], [], []>} : vector<2x128xf32>, vector<128x4xf32>, vector<2x4xf32> -> vector<2x4xf32>
    %18 = vector.broadcast %16 : vector<1x4xf32> to vector<2x4xf32>
    %19 = arith.addf %17, %18 : vector<2x4xf32>
    %c0_17 = arith.constant 0 : index
    %c0_18 = arith.constant 0 : index
    %20 = vector.load %arg7[%c0_17, %c0_18] : memref<2x4xf32, #tpu.memory_space<vmem>>, vector<2x4xf32>
    tpu.vector_store %arg7[%c0_17, %c0_18], %19 {strides = array<i32>} : memref<2x4xf32, #tpu.memory_space<vmem>>, vector<2x4xf32>,
    return
  }
}

</mosaic_0001>

<bundles_post_ra>
// kernel: qnetwork_forward.1
= control target key start
LH: loop header
LB: loop body
LE: loop exit
PB: predicated region body
PF: predicated region fallthrough
CT: control target
= control target key end

     0   :  { %vm36_vm0 = vcmask 64512   ;;  %v505_v2 = vmov 0.0   ;;  %vm506_vm1 = vmmov 0   ;;  %v507_v6 = vmov 0.0|0.0   ;;  %s691_s0 = inlined_call_operand.vmem [shape: f32[2,8], index: 0, kind: input, shape index: {}]   ;;  %s692_s1 = inlined_call_operand.vmem [shape: f32[8,128], index: 1, kind: input, shape index: {}]   ;;  %s693_s2 = inlined_call_operand.vmem [shape: f32[1,128], index: 2, kind: input, shape index: {}]   ;;  %s694_s3 = inlined_call_operand.vmem [shape: f32[128,128], index: 3, kind: input, shape index: {}]   ;;  %s695_s4 = inlined_call_operand.vmem [shape: f32[1,128], index: 4, kind: input, shape index: {}]   ;;  %s696_s5 = inlined_call_operand.vmem [shape: f32[128,4], index: 5, kind: input, shape index: {}]   ;;  %s697_s6 = inlined_call_operand.vmem [shape: f32[1,4], index: 6, kind: input, shape index: {}]   ;;  %s698_s7 = inlined_call_operand.hbm [shape: f32[2,4], index: 7, kind: output, shape index: {}]  }
   0x1   :  { %v28_v0 = vld [vmem:[%s692_s1] sm:$0xff]  ;;  %354 = vmatprep.subr.mxu0 %v505_v2  ;;  %356 = vmatprep.mubr.msk.f32.mxu0 %vm506_vm1, %v505_v2  ;;  %v112_v4 = vld [vmem:[%s694_s3 + $0x8] sm:$0xff]  ;;  %v113_v5 = vld [vmem:[%s694_s3 + $0x10] sm:$0xff] }
   0x2   :  { %v27_v1 = vld [vmem:[%s691_s0] sm:$0x3]  ;;  %355 = vmatpush3.msra.mxu0 %v28_v0  ;;  %429 = vmatprep.subr.bf16.mxu1 %v507_v6  ;;  %v114_v8 = vld [vmem:[%s694_s3 + $0x18] sm:$0xff]  ;;  %v116_v11 = vld [vmem:[%s694_s3 + $0x28] sm:$0xff] }
   0x3   :  { %v111_v3 = vld [vmem:[%s694_s3] sm:$0xff]  ;;  %357 = vmatmul.mubr.msk.f32.vlgmr.msra.gmra.mrb[0].mxu0 %vm36_vm0, %v27_v1  ;;  %391 = vmatprep.mubr.msk.f32.mxu1 %vm506_vm1, %v505_v2  ;;  %v433_v9 = vpack.c.bf16 %v114_v8, %v113_v5 }
   0x4   :  { %v430_v7 = vpack.c.bf16 %v112_v4, %v111_v3  ;;  %453 = vmatprep.subr.bf16.mxu0 %v507_v6  ;;  %v115_v10 = vld [vmem:[%s694_s3 + $0x20] sm:$0xff]  ;;  %426 = vmatprep.mubr.msk.f32.mxu0 %vm506_vm1, %v505_v2 }
   0x6   :  { %431 = vmatpush3.bf16.msra.mxu1 %v430_v7 }
   0x7   :  { %432 = vmatprep.subr.bf16.mxu1 %v507_v6 }
   0x8   :  { %12 = vsyncpa [#allocation3], 0  ;;  %v436_v12 = vpack.c.bf16 %v116_v11, %v115_v10  ;;  %v117_v13 = vld [vmem:[%s694_s3 + $0x30] sm:$0xff]  ;;  %v118_v14 = vld [vmem:[%s694_s3 + $0x38] sm:$0xff]  ;;  %s508_s20 = smov [#allocation2]   ;;  %vm298_vm2 = vcmask 25600  }
   0x9   :  { %v439_v15 = vpack.c.bf16 %v118_v14, %v117_v13  ;;  %v119_v16 = vld [vmem:[%s694_s3 + $0x40] sm:$0xff]  ;;  %v120_v17 = vld [vmem:[%s694_s3 + $0x48] sm:$0xff]  ;;  %v121_v19 = vld [vmem:[%s694_s3 + $0x50] sm:$0xff]  ;;  %s306_s21 = sshll.u32 %s508_s20, 4  ;;  %s307_s21 = int_to_ptr.vmem [resolvable:$true] %s306_s21 }
   0xa   :  { %434 = vmatpush3.bf16.msra.mxu1 %v433_v9  ;;  %v442_v18 = vpack.c.bf16 %v120_v17, %v119_v16  ;;  %v122_v20 = vld [vmem:[%s694_s3 + $0x58] sm:$0xff]  ;;  %v123_v22 = vld [vmem:[%s694_s3 + $0x60] sm:$0xff]  ;;  %v124_v23 = vld [vmem:[%s694_s3 + $0x68] sm:$0xff]  ;;  %p486_p1 = scmp.lt.s32.totalorder %s307_s21, %s307_s21 }
   0xb   :  { %435 = vmatprep.subr.bf16.mxu1 %v507_v6  ;;  %v445_v21 = vpack.c.bf16 %v122_v20, %v121_v19  ;;  %v448_v24 = vpack.c.bf16 %v124_v23, %v123_v22  ;;  %v125_v25 = vld [vmem:[%s694_s3 + $0x70] sm:$0xff]  ;;  %v126_v26 = vld [vmem:[%s694_s3 + $0x78] sm:$0xff]  ;;  %v205_v28 = vld [vmem:[%s696_s5] sm:$0xff] }
   0xc   :  { %v451_v27 = vpack.c.bf16 %v126_v26, %v125_v25  ;;  %v206_v29 = vld [vmem:[%s696_s5 + $0x8] sm:$0xff]  ;;  %v207_v30 = vld [vmem:[%s696_s5 + $0x10] sm:$0xff]  ;;  %v208_v32 = vld [vmem:[%s696_s5 + $0x18] sm:$0xff] }
   0xd   :  { %v454_v31 = vpack.c.bf16 %v206_v29, %v205_v28  ;;  %v457_v33 = vpack.c.bf16 %v208_v32, %v207_v30  ;;  %v209_v34 = vld [vmem:[%s696_s5 + $0x20] sm:$0xff]  ;;  %v210_v35 = vld [vmem:[%s696_s5 + $0x28] sm:$0xff]  ;;  %v211_v37 = vld [vmem:[%s696_s5 + $0x30] sm:$0xff] }
   0xe   :  { %437 = vmatpush3.bf16.msra.mxu1 %v436_v12  ;;  %v460_v36 = vpack.c.bf16 %v210_v35, %v209_v34  ;;  %v212_v38 = vld [vmem:[%s696_s5 + $0x38] sm:$0xff]  ;;  %v213_v40 = vld [vmem:[%s696_s5 + $0x40] sm:$0xff]  ;;  %v214_v41 = vld [vmem:[%s696_s5 + $0x48] sm:$0xff] }
   0xf   :  { %438 = vmatprep.subr.bf16.mxu1 %v507_v6  ;;  %455 = vmatpush3.bf16.msra.mxu0 %v454_v31  ;;  %v463_v39 = vpack.c.bf16 %v212_v38, %v211_v37  ;;  %v466_v42 = vpack.c.bf16 %v214_v41, %v213_v40  ;;  %v215_v43 = vld [vmem:[%s696_s5 + $0x50] sm:$0xff]  ;;  %v216_v44 = vld [vmem:[%s696_s5 + $0x58] sm:$0xff]  ;;  %v217_v46 = vld [vmem:[%s696_s5 + $0x60] sm:$0xff] }
  0x10   :  { %456 = vmatprep.subr.bf16.mxu0 %v507_v6  ;;  %v469_v45 = vpack.c.bf16 %v216_v44, %v215_v43  ;;  %v218_v47 = vld [vmem:[%s696_s5 + $0x68] sm:$0xff]  ;;  %v314_v49 = vld [vmem:[%s693_s2] ss:$0 sm:$0xff]  ;;  %v219_v54 = vld [vmem:[%s696_s5 + $0x70] sm:$0xff] }
  0x11   :  { %v472_v48 = vpack.c.bf16 %v218_v47, %v217_v46  ;;  %v220_v55 = vld [vmem:[%s696_s5 + $0x78] sm:$0xff]  ;;  %v316_v57 = vld [vmem:[%s695_s4] ss:$0 sm:$0xff]  ;;  %s481_s5 = scalar_lea.vmem %s307_s21, 32 }
  0x12   :  { %440 = vmatpush3.bf16.msra.mxu1 %v439_v15  ;;  %v475_v56 = vpack.c.bf16 %v220_v55, %v219_v54  ;;  %v317_v62 = vld [vmem:[%s697_s6] ss:$0 sm:$0xff]  ;;  %p482_p0 = scmp.ne.s32.totalorder %s307_s21, %s481_s5  ;;  %p487_p2 = scmp.lt.s32.totalorder %s481_s5, %s481_s5 }
  0x13   :  { %441 = vmatprep.subr.bf16.mxu1 %v507_v6  ;;  %458 = vmatpush3.bf16.msra.mxu0 %v457_v33 }
  0x14   :  { %459 = vmatprep.subr.bf16.mxu0 %v507_v6  ;;  %p488_p3 = por %p487_p2, %p486_p1 }
  0x16   :  { %443 = vmatpush3.bf16.msra.mxu1 %v442_v18  ;;  %p489_p4 = pnand %p488_p3, %p482_p0 }
  0x17   :  { %444 = vmatprep.subr.bf16.mxu1 %v507_v6  ;;  %461 = vmatpush3.bf16.msra.mxu0 %v460_v36 }
  0x18   :  { %462 = vmatprep.subr.bf16.mxu0 %v507_v6 }
  0x1a   :  { %446 = vmatpush3.bf16.msra.mxu1 %v445_v21 }
  0x1b   :  { %447 = vmatprep.subr.bf16.mxu1 %v507_v6  ;;  %464 = vmatpush3.bf16.msra.mxu0 %v463_v39 }
  0x1c   :  { %465 = vmatprep.subr.bf16.mxu0 %v507_v6 }
  0x1e   :  { %449 = vmatpush3.bf16.msra.mxu1 %v448_v24 }
  0x1f   :  { %450 = vmatprep.subr.bf16.mxu1 %v507_v6  ;;  %467 = vmatpush3.bf16.msra.mxu0 %v466_v42 }
  0x20   :  { %468 = vmatprep.subr.bf16.mxu0 %v507_v6 }
  0x22   :  { %452 = vmatpush3.bf16.msra.mxu1 %v451_v27 }
  0x23   :  { %470 = vmatpush3.bf16.msra.mxu0 %v469_v45 }
  0x24   :  { %471 = vmatprep.subr.bf16.mxu0 %v507_v6 }
  0x27   :  { %473 = vmatpush3.bf16.msra.mxu0 %v472_v48 }
  0x28   :  { %474 = vmatprep.subr.bf16.mxu0 %v507_v6 }
  0x2b   :  { %476 = vmatpush3.bf16.msra.mxu0 %v475_v56 }
  0xd6   :  { %v106_v50 = vpop.f32.mrb[0].mxu0 }
  0xd7   :  { %v107_v51 = vadd.f32 %v314_v49, %v106_v50  ;;  %v358_v52 = vpop.f32.mrb[1].mxu0 }
  0xd9   :  { %v110_v53 = vmax.f32 %v107_v51, 0.0 }
  0xdb   :  { %392 = vmatmul.mubr.f32.vlgmr.msra.gmra.mrb[0].mxu1 %v110_v53 }
 0x1ae   :  { %v200_v58 = vpop.f32.mrb[0].mxu1 }
 0x1af   :  { %v201_v59 = vadd.f32 %v316_v57, %v200_v58  ;;  %v393_v60 = vpop.f32.mrb[1].mxu1 }
 0x1b1   :  { %v204_v61 = vmax.f32 %v201_v59, 0.0 }
 0x1b3   :  { %427 = vmatmul.mubr.f32.vlgmr.msra.gmra.mrb[2].mxu0 %v204_v61 }
 0x286   :  { %v294_v63 = vpop.f32.mrb[2].mxu0 }
 0x287   :  { %v295_v0 = vadd.f32 %v317_v62, %v294_v63  ;;  %v428_v1 = vpop.f32.mrb[3].mxu0 }
 0x289   :  { %299 = vst.msk [vmem:[#allocation2] sm:$0x3] %vm298_vm2, %v295_v0 }
 0x28a   :  { %492 = shalt.err (!%p489_p4)
}
 0x28b   :  { %s493_s23 = scalar_lea.hbm %s698_s7, 32 }
 0x28c   :  { %p494_p5 = scmp.ne.s32.totalorder %s698_s7, %s493_s23  ;;  %p497_p6 = scmp.lt.u32.totalorder %s493_s23, %s698_s7 }
 0x28e   :  { %p499_p7 = pnand %p497_p6, %p494_p5 }
 0x290   :  { %502 = shalt.err (!%p499_p7)
}
 0x291   :  { %309 = dma.vmem_to_hbm [thread:$0]  %s307_s21, 32, %s698_s7, [#allocation3]  }
 0x292   :  { %503 = dma.done.wait [#allocation3], 32  }
 0x293   :  { %504 = vsyncadd [#allocation3], 4294967264 }
 0x294   :  { %313 = vsyncpa [#allocation3], 1 }

</bundles_post_ra>
